<compile_context>
chip_gen: v5e
topology: v5e:2x2
jax: 0.10.0
libtpu: 0.0.40
codegen_flags: <defaults>
</compile_context>

<pallas_src>
import functools
import math

import numpy as np
import jax
import jax.numpy as jnp
from jax import lax
from jax.experimental import pallas as pl
from jax.experimental.pallas import tpu as pltpu


def _round_up(a, b):
    return ((a + b - 1) // b) * b


def _tpu_vmem_bytes():
    try:
        return pltpu.get_tpu_info().vmem_capacity_bytes
    except Exception:
        return 64 << 20


def _pick_tk():
    # deeper K tile on 128 MiB parts (v5e/v6e), shallower on v7x (64 MiB physical)
    return 2048 if _tpu_vmem_bytes() >= (100 << 20) else 1024


def _vmem_limit():
    # explicit scoped-VMEM limit (review): leave headroom under physical capacity
    return (96 << 20) if _tpu_vmem_bytes() >= (100 << 20) else (48 << 20)


def _tile_plan(M, K, N, itemsize, tm_max=1024, tn_max=1024, tk=None):
    """Shared tile plan for matmul_bias and init-time operand pre-padding."""
    sub = 8 if itemsize >= 4 else 16
    if tk is None:
        tk = _pick_tk()
    tm = min(tm_max, _round_up(M, sub))
    tn = min(tn_max, _round_up(N, 128))          # lane-dense / full-N output tiles
    tk = min(tk, _round_up(K, 128))
    return tm, tn, tk, _round_up(M, tm), _round_up(K, tk), _round_up(N, tn)


def _batch_block(B, Lr, target_rows=256):
    """Batches per grid step so that (Bb*Lr) rows are sublane-aligned (or cover all rows)."""
    need = 8 // math.gcd(Lr, 8)
    if B <= 2 * need:
        return B, 1, B                            # single block over the whole batch
    Bb = max(need, (min(B, max(1, target_rows // Lr)) // need) * need)
    nb = pl.cdiv(B, Bb)
    return Bb, nb, Bb * nb


def _norm_plan(B):
    if B <= 8:
        return B, 1, B
    nb = pl.cdiv(B, 8)
    return 8, nb, 8 * nb


# ----------------------------------------------------------------------------
# Kernel 1: instance normalization over dim 1 (unbiased=False, eps=1e-5) fused
# with the channel mean used by the (exact) fold in front of Linear_Encoder.
# Only the channel mean is written back (the normalized tensor is never needed).
# ----------------------------------------------------------------------------
def _norm_cmean_kernel(x_ref, xm_ref):
    x = x_ref[...]                                      # (Bb, L, M)
    mean = jnp.mean(x, axis=1, keepdims=True)
    xc = x - mean
    var = jnp.mean(xc * xc, axis=1, keepdims=True)      # torch.var(unbiased=False)
    xn = xc / jnp.sqrt(var + 1e-5)
    xm_ref[...] = jnp.mean(xn, axis=2)                  # mean over channels -> (Bb, L)


def instance_norm_channel_mean(x):
    B, L, M = x.shape
    Bb, nb, Bp = _norm_plan(B)
    if Bp != B:
        x = jnp.pad(x, ((0, Bp - B), (0, 0), (0, 0)))
    out = pl.pallas_call(
        _norm_cmean_kernel,
        out_shape=jax.ShapeDtypeStruct((Bp, L), jnp.float32),
        grid=(nb,),
        in_specs=[pl.BlockSpec((Bb, L, M), lambda i: (i, 0, 0))],
        out_specs=pl.BlockSpec((Bb, L), lambda i: (i, 0)),
        compiler_params=pltpu.CompilerParams(dimension_semantics=("parallel",)),
    )(x)
    return out if Bp == B else out[:B]


# ----------------------------------------------------------------------------
# Kernel 2: tiled matmul + bias (y = x @ wt + bias).  f32 VMEM accumulator,
# reduction axis last, bias folded into the k==0 accumulator init.
# Operands are expected pre-cast / pre-padded (done once at init for the big ones).
# ----------------------------------------------------------------------------
def _matmul_kernel(x_ref, w_ref, b_ref, o_ref, acc_ref):
    @pl.when(pl.program_id(2) == 0)
    def _():
        acc_ref[...] = pl.broadcast_to(b_ref[...], acc_ref.shape)

    acc_ref[...] += jnp.dot(x_ref[...], w_ref[...],
                            preferred_element_type=jnp.float32)

    @pl.when(pl.program_id(2) == pl.num_programs(2) - 1)
    def _():
        o_ref[...] = acc_ref[...].astype(o_ref.dtype)


def matmul_bias(x, wt, b, *, bias_axis=1, out_dtype=jnp.float32,
                tm_max=1024, tn_max=1024, tk=None):
    """x: (M, K), wt: (K, N) pre-transposed, b: bias along N (axis=1) or rows M (axis=0)."""
    M, K = x.shape
    Kw, N = wt.shape
    assert K == Kw
    wt = wt.astype(x.dtype)                             # no-op when pre-cast at init
    itemsize = jnp.dtype(x.dtype).itemsize
    tm, tn, tk, Mp, Kp, Np = _tile_plan(M, K, N, itemsize, tm_max, tn_max, tk)
    if (Mp, Kp) != (M, K):                              # skipped for pre-padded params
        x = jnp.pad(x, ((0, Mp - M), (0, Kp - K)))
    if (Kp, Np) != (K, N):
        wt = jnp.pad(wt, ((0, Kp - K), (0, Np - N)))
    b = b.astype(jnp.float32)
    if bias_axis == 1:                                  # bias over output features
        if Np != N:
            b = jnp.pad(b, (0, Np - N))
        b = b.reshape(1, Np)
        b_spec = pl.BlockSpec((1, tn), lambda i, j, k: (0, j))
    else:                                               # bias over output rows
        if Mp != M:
            b = jnp.pad(b, (0, Mp - M))
        b = b.reshape(Mp, 1)
        b_spec = pl.BlockSpec((tm, 1), lambda i, j, k: (i, 0))
    out = pl.pallas_call(
        _matmul_kernel,
        out_shape=jax.ShapeDtypeStruct((Mp, Np), out_dtype),
        grid=(Mp // tm, Np // tn, Kp // tk),
        in_specs=[pl.BlockSpec((tm, tk), lambda i, j, k: (i, k)),
                  pl.BlockSpec((tk, tn), lambda i, j, k: (k, j)),
                  b_spec],
        out_specs=pl.BlockSpec((tm, tn), lambda i, j, k: (i, j)),
        scratch_shapes=[pltpu.VMEM((tm, tn), jnp.float32)],
        compiler_params=pltpu.CompilerParams(
            dimension_semantics=("parallel", "parallel", "arbitrary"),
            vmem_limit_bytes=_vmem_limit()),
    )(x, wt, b)
    if (Mp, Np) != (M, N):
        out = out[:M, :N]
    return out


# ----------------------------------------------------------------------------
# Kernel 3: fused token embedding (circular Conv1d k=3, no bias, taps fused into
# one (3C, d_model) weight) + sinusoidal PE + Linear_Encoder projection, over
# packed (batch*L) rows.
# ----------------------------------------------------------------------------
def _token_embed_kernel(u_ref, w3_ref, pe_ref, ewt_ref, eb_ref, o_ref):
    y = jnp.dot(u_ref[...], w3_ref[...],
                preferred_element_type=jnp.float32) + pe_ref[...]
    o_ref[...] = jnp.dot(y, ewt_ref[...],
                         preferred_element_type=jnp.float32) + eb_ref[...]


def token_embed_encode(x, w3, pe, enc):
    """x: (B, Lr, C)  ->  (B*Lr, d_model) rows of Linear_Encoder(DataEmbedding(x))."""
    # TODO(synk): DataEmbedding class definition not provided; implemented as the standard
    # TokenEmbedding (circular Conv1d, kernel=3, bias=False) + sinusoidal positional
    # encoding, with dropout as eval-mode identity.
    B, Lr, C = x.shape
    d_model = w3.shape[1]
    ewt, eb = enc
    # circular pad + 3-tap unfold (tiny, XLA side, done once per call)
    xp = jnp.concatenate([x[:, -1:, :], x, x[:, :1, :]], axis=1)          # (B, Lr+2, C)
    u = jnp.concatenate([xp[:, 0:Lr], xp[:, 1:Lr + 1], xp[:, 2:Lr + 2]],
                        axis=-1)                                          # (B, Lr, 3C)
    Bb, nb, Bp = _batch_block(B, Lr)
    if Bp != B:
        u = jnp.pad(u, ((0, Bp - B), (0, 0), (0, 0)))
    rows = Bb * Lr
    u = u.reshape(Bp * Lr, 3 * C)
    pe_t = jnp.tile(pe, (Bb, 1))                                          # (rows, d_model)
    out = pl.pallas_call(
        _token_embed_kernel,
        out_shape=jax.ShapeDtypeStruct((Bp * Lr, d_model), jnp.float32),
        grid=(nb,),
        in_specs=[pl.BlockSpec((rows, 3 * C), lambda i: (i, 0)),
                  pl.BlockSpec((3 * C, d_model), lambda i: (0, 0)),
                  pl.BlockSpec((rows, d_model), lambda i: (0, 0)),
                  pl.BlockSpec((d_model, d_model), lambda i: (0, 0)),
                  pl.BlockSpec((1, d_model), lambda i: (0, 0))],
        out_specs=pl.BlockSpec((rows, d_model), lambda i: (i, 0)),
        compiler_params=pltpu.CompilerParams(dimension_semantics=("parallel",)),
    )(u, w3, pe_t, ewt, eb)
    return out if Bp == B else out[:B * Lr]


# ----------------------------------------------------------------------------
# Kernel 4: fused FeatureAlignmentLayer over flattened rows (cross-attention is
# row-independent).  q-proj -> per-head attention (leading-axis head indexing,
# bf16 MXU operands, f32 softmax) -> one fused out-projection.  K/V and weights
# have constant block indices: DMA'd once, resident in VMEM across the grid.
# ----------------------------------------------------------------------------
def _feature_align_kernel(t_ref, k_ref, v_ref, wq_ref, bq_ref, wo_ref, bo_ref,
                          o_ref, *, H, scale):
    t = t_ref[...]                                                   # (R, d_model) f32
    heads = []
    for h in range(H):                                               # static head loop
        q = jnp.dot(t, wq_ref[h], preferred_element_type=jnp.float32) + bq_ref[h]
        k = k_ref[h]                                                 # (S, E) bf16
        v = v_ref[h]
        s = lax.dot_general(q.astype(k.dtype), k, (((1,), (1,)), ((), ())),
                            preferred_element_type=jnp.float32) * scale
        m = jnp.max(s, axis=-1, keepdims=True)
        p = jnp.exp(s - m)
        a = p * pl.reciprocal(jnp.sum(p, axis=-1, keepdims=True), approx=True)
        heads.append(jnp.dot(a.astype(v.dtype), v,
                             preferred_element_type=jnp.float32))    # (R, E)
    o = heads[0] if H == 1 else jnp.concatenate(heads, axis=-1)      # (R, H*E)
    o_ref[...] = jnp.dot(o, wo_ref[...],
                         preferred_element_type=jnp.float32) + bo_ref[...]


def feature_align(t_rows, k_src, v_src, ap):
    """t_rows: (R, d_model) flattened query rows; k_src/v_src: (H, S, E) bf16."""
    R, d_model = t_rows.shape
    H, S, E = k_src.shape
    d_llm = ap["wo_t"].shape[-1]
    tr = _round_up(R, 8) if R <= 256 else 128
    Rp = _round_up(R, tr)
    if Rp != R:
        t_rows = jnp.pad(t_rows, ((0, Rp - R), (0, 0)))
    kernel = functools.partial(_feature_align_kernel, H=H, scale=1.0 / float(E) ** 0.5)
    out = pl.pallas_call(
        kernel,
        out_shape=jax.ShapeDtypeStruct((Rp, d_llm), jnp.float32),
        grid=(Rp // tr,),
        in_specs=[pl.BlockSpec((tr, d_model), lambda i: (i, 0)),
                  pl.BlockSpec((H, S, E), lambda i: (0, 0, 0)),      # resident K
                  pl.BlockSpec((H, S, E), lambda i: (0, 0, 0)),      # resident V
                  pl.BlockSpec((H, d_model, E), lambda i: (0, 0, 0)),
                  pl.BlockSpec((H, 1, E), lambda i: (0, 0, 0)),
                  pl.BlockSpec((H * E, d_llm), lambda i: (0, 0)),
                  pl.BlockSpec((1, d_llm), lambda i: (0, 0))],
        out_specs=pl.BlockSpec((tr, d_llm), lambda i: (i, 0)),
        compiler_params=pltpu.CompilerParams(
            dimension_semantics=("parallel",),
            vmem_limit_bytes=_vmem_limit()),
    )(t_rows, k_src, v_src, ap["wq_h"], ap["bq_h"], ap["wo_t"], ap["bo"])
    return out if Rp == R else out[:R]


# ----------------------------------------------------------------------------
# Sinusoidal positional encoding (host-side constant table)
# ----------------------------------------------------------------------------
def sinusoidal_pe(L, d_model):
    pos = np.arange(L, dtype=np.float32)[:, None]
    i2 = np.arange(0, d_model, 2, dtype=np.float32)
    div = np.exp(-np.log(10000.0) * i2 / d_model)
    pe = np.zeros((L, d_model), dtype=np.float32)
    pe[:, 0::2] = np.sin(pos * div)
    pe[:, 1::2] = np.cos(pos * div)
    return jnp.asarray(pe)


# ----------------------------------------------------------------------------
# LLMDetector forward
# ----------------------------------------------------------------------------
def llm_detector_forward(params, cfg, x):
    B, L, M = x.shape
    P = cfg["patch_size"]
    N = L // P
    H = cfg["n_heads"]
    d_model = cfg["d_model"]
    d_llm = cfg["llm_dim"]
    ntok = cfg["num_tokens"]
    E = d_model // H
    HE = H * E
    assert cfg["channel"] == M, "'(b c)' reduce requires channel == enc_in"

    # 1) per-window instance normalization (unbiased=False, eps=1e-5) fused with the
    #    channel mean; the normalized tensor itself is never materialized in HBM.
    xm = instance_norm_channel_mean(x)                                # (B, L)

    # 2) x_ori / embedding_window_size is dead in the reference (Linear_Encoder ignores
    #    its third argument) -> removed entirely.
    # 3) TODO(synk): FullAttention (channel_fusion) class definition not provided (called
    #    with one positional argument); treated as an identity pass-through.

    # 4-6) fused patch / point embedding + Linear_Encoder, with the channel mean folded in
    #      FRONT of the (bias-free conv + PE + linear) chain — exact since every stage is
    #      affine and shared across channels.  'b m (n p)' / 'b m (p n)' rearranges below.
    series = token_embed_encode(xm.reshape(B, N, P), params["emb_patch_w3"],
                                sinusoidal_pe(N, d_model), params["patch_enc"])   # (B*N, dm)
    prior = token_embed_encode(xm.reshape(B, P, N), params["emb_point_w3"],
                               sinusoidal_pe(P, d_model), params["point_enc"])    # (B*P, dm)

    # 5) mapping layer: source_embeddings = map_w @ WE + map_b[:, None]
    #    (== mapping_layer(WE^T)^T without materializing either transpose); operands are
    #    pre-cast bf16 + pre-padded at init, f32 accumulation, full-N / large-M tiles.
    src = matmul_bias(params["map_w"], params["word_embeddings"], params["map_b"],
                      bias_axis=0, out_dtype=jnp.bfloat16)            # (ntok_p, d_llm_p) bf16

    # 7) fused k|v projection of the source embeddings (bf16, computed once, shared by
    #    both alignment calls); padded src columns hit zero weight rows so this is exact.
    kv = matmul_bias(src, params["align"]["wkv_t"], params["align"]["bkv"],
                     out_dtype=jnp.bfloat16)                          # (ntok_p, 2HE_p) bf16
    if kv.shape[0] != ntok:
        kv = kv[:ntok]
    k_src = jnp.transpose(kv[:, :HE].reshape(ntok, H, E), (1, 0, 2))  # (H, S, E) bf16
    v_src = jnp.transpose(kv[:, HE:2 * HE].reshape(ntok, H, E), (1, 0, 2))

    patch = feature_align(series, k_src, v_src, params["align"]).reshape(B, N, d_llm)
    point = feature_align(prior, k_src, v_src, params["align"]).reshape(B, P, d_llm)

    # 8) TODO(synk): GPT-2 tokenizer / prompt construction and the frozen llm_model forward
    # (rep_1 / rep_2 slicing) need pretrained checkpoint weights and have no Pallas
    # equivalent here; returning the aligned patch-wise / point-wise representations.
    return patch, point


# ----------------------------------------------------------------------------
# Deterministic parameter initialization (shapes follow the module's __init__).
# Linear weights are stored pre-transposed (in, out); the big mapping-layer and
# k|v-projection operands are pre-cast to bf16 and pre-padded to the tile plan.
# ----------------------------------------------------------------------------
def init_params(key, cfg):
    d_model = cfg["d_model"]
    n_heads = cfg["n_heads"]
    d_keys = d_model // n_heads
    HE = d_keys * n_heads
    d_llm = cfg["llm_dim"]
    vocab = cfg["vocab_size"]
    ntok = cfg["num_tokens"]
    P = cfg["patch_size"]
    N = cfg["win_size"] // P

    def dense(k, n_in, n_out, scale=0.05):
        kw, kb = jax.random.split(k)
        return (scale * jax.random.normal(kw, (n_in, n_out), jnp.float32),   # (in, out)
                scale * jax.random.normal(kb, (n_out,), jnp.float32))

    def conv_fused(k, c_in, scale=0.05):
        w = scale * jax.random.normal(k, (d_model, c_in, 3), jnp.float32)    # torch Conv1d layout
        taps = [jnp.transpose(w[:, :, t]) for t in range(3)]                 # 3 x (c_in, d_model)
        return jnp.concatenate(taps, axis=0)                                 # (3*c_in, d_model)

    ks = jax.random.split(key, 11)
    wq_t, bq = dense(ks[0], d_model, HE)
    wk_t, bk = dense(ks[1], d_llm, HE)
    wv_t, bv = dense(ks[2], d_llm, HE)
    wo_t, bo = dense(ks[3], HE, d_llm)
    patch_enc_w, patch_enc_b = dense(ks[4], d_model, d_model)
    point_enc_w, point_enc_b = dense(ks[5], d_model, d_model)
    map_w = 0.05 * jax.random.normal(ks[6], (ntok, vocab), jnp.float32)
    map_b = 0.05 * jax.random.normal(ks[7], (ntok,), jnp.float32)
    word_emb = 0.05 * jax.random.normal(ks[8], (vocab, d_llm), jnp.float32)

    # mapping-layer operands: bf16 cast + tile-aligned zero padding done ONCE here
    _, _, _, Mp, Kp, Np = _tile_plan(ntok, vocab, d_llm, itemsize=2)
    map_w_p = jnp.pad(map_w, ((0, Mp - ntok), (0, Kp - vocab))).astype(jnp.bfloat16)
    we_p = jnp.pad(word_emb, ((0, Kp - vocab), (0, Np - d_llm))).astype(jnp.bfloat16)
    map_b_p = jnp.pad(map_b, (0, Mp - ntok))

    # fused key|value projection: bf16, K padded to the mapping layer's padded llm_dim
    wkv = jnp.concatenate([wk_t, wv_t], axis=1)                       # (d_llm, 2*HE)
    bkv = jnp.concatenate([bk, bv], axis=0)
    HE2p = _round_up(2 * HE, 128)
    wkv_p = jnp.pad(wkv, ((0, Np - d_llm), (0, HE2p - 2 * HE))).astype(jnp.bfloat16)
    bkv_p = jnp.pad(bkv, (0, HE2p - 2 * HE))

    return {
        "emb_patch_w3": conv_fused(ks[9], P),                         # (3P, d_model)
        "emb_point_w3": conv_fused(ks[10], N),                        # (3N, d_model)
        "patch_enc": (patch_enc_w, patch_enc_b.reshape(1, d_model)),
        "point_enc": (point_enc_w, point_enc_b.reshape(1, d_model)),
        "map_w": map_w_p, "map_b": map_b_p, "word_embeddings": we_p,
        "align": {
            # head-leading layouts -> no lane slicing inside the alignment kernel
            "wq_h": jnp.transpose(wq_t.reshape(d_model, n_heads, d_keys), (1, 0, 2)),
            "bq_h": bq.reshape(n_heads, 1, d_keys),
            "wkv_t": wkv_p, "bkv": bkv_p,
            "wo_t": wo_t, "bo": bo.reshape(1, d_llm),
        },
    }


if __name__ == "__main__":
    cfg = dict(
        win_size=20,
        enc_in=2,
        channel=2,        # must equal enc_in for the '(b m)' / '(b c)' rearranges
        patch_size=5,
        d_model=32,
        n_heads=1,
        vocab_size=96,    # synthetic stand-in for GPT-2 vocab
        llm_dim=32,       # synthetic stand-in for GPT-2 hidden size
        num_tokens=48,    # synthetic stand-in for num_tokens=1000
    )
    key = jax.random.PRNGKey(0)
    kp, kx = jax.random.split(key)
    params = init_params(kp, cfg)
    x = jax.random.normal(kx, (2, cfg["win_size"], cfg["enc_in"]), jnp.float32)

    patch_rep, point_rep = llm_detector_forward(params, cfg, x)
    jax.block_until_ready((patch_rep, point_rep))

    assert patch_rep.shape == (2, cfg["win_size"] // cfg["patch_size"], cfg["llm_dim"])
    assert point_rep.shape == (2, cfg["patch_size"], cfg["llm_dim"])
    print("KERNEL_OK")
</pallas_src>

<mosaic_0001>
module attributes {stable_mosaic.version = 11 : i64} {
  func.func @_norm_cmean_kernel(%arg0: i32, %arg1: memref<2x20x2xf32, #tpu.memory_space<vmem>>, %arg2: memref<2x20xf32, #tpu.memory_space<vmem>>) attributes {dimension_semantics = [#tpu.dimension_semantics<parallel>], iteration_bounds = array<i64: 1>, scalar_prefetch = 0 : i64, scratch_operands = 0 : i64, tpu.core_type = #tpu.core_type<tc>, window_params = [{transform_indices = @transform_0, window_bounds = array<i64: 2, 20, 2>}, {transform_indices = @transform_1, window_bounds = array<i64: 2, 20>}]} {
    %c0 = arith.constant 0 : index
    %c0_0 = arith.constant 0 : index
    %c0_1 = arith.constant 0 : index
    %0 = vector.load %arg1[%c0, %c0_0, %c0_1] : memref<2x20x2xf32, #tpu.memory_space<vmem>>, vector<2x20x2xf32>
    %cst = arith.constant dense<0.000000e+00> : vector<2x2xf32>
    %1 = vector.multi_reduction <add>, %0, %cst [1] : vector<2x20x2xf32> to vector<2x2xf32>
    %2 = vector.shape_cast %1 : vector<2x2xf32> to vector<2x1x2xf32>
    %cst_2 = arith.constant 2.000000e+01 : f32
    %3 = vector.broadcast %cst_2 : f32 to vector<2x1x2xf32>
    %4 = arith.divf %2, %3 : vector<2x1x2xf32>
    %5 = vector.broadcast %4 : vector<2x1x2xf32> to vector<2x20x2xf32>
    %6 = arith.subf %0, %5 : vector<2x20x2xf32>
    %7 = arith.mulf %6, %6 : vector<2x20x2xf32>
    %cst_3 = arith.constant dense<0.000000e+00> : vector<2x2xf32>
    %8 = vector.multi_reduction <add>, %7, %cst_3 [1] : vector<2x20x2xf32> to vector<2x2xf32>
    %9 = vector.shape_cast %8 : vector<2x2xf32> to vector<2x1x2xf32>
    %cst_4 = arith.constant 2.000000e+01 : f32
    %10 = vector.broadcast %cst_4 : f32 to vector<2x1x2xf32>
    %11 = arith.divf %9, %10 : vector<2x1x2xf32>
    %cst_5 = arith.constant 9.99999974E-6 : f32
    %12 = vector.broadcast %cst_5 : f32 to vector<2x1x2xf32>
    %13 = arith.addf %11, %12 : vector<2x1x2xf32>
    %14 = math.sqrt %13 : vector<2x1x2xf32>
    %15 = vector.broadcast %14 : vector<2x1x2xf32> to vector<2x20x2xf32>
    %16 = arith.divf %6, %15 : vector<2x20x2xf32>
    %cst_6 = arith.constant dense<0.000000e+00> : vector<2x20xf32>
    %17 = vector.multi_reduction <add>, %16, %cst_6 [2] : vector<2x20x2xf32> to vector<2x20xf32>
    %cst_7 = arith.constant 2.000000e+00 : f32
    %18 = vector.broadcast %cst_7 : f32 to vector<2x20xf32>
    %19 = arith.divf %17, %18 : vector<2x20xf32>
    %c0_8 = arith.constant 0 : index
    %c0_9 = arith.constant 0 : index
    %20 = vector.load %arg2[%c0_8, %c0_9] : memref<2x20xf32, #tpu.memory_space<vmem>>, vector<2x20xf32>
    tpu.vector_store %arg2[%c0_8, %c0_9], %19 {strides = array<i32>} : memref<2x20xf32, #tpu.memory_space<vmem>>, vector<2x20xf32>,
    return
  }
  func.func @transform_0(%arg0: i32) -> (i32, i32, i32) {
    %c0_i32 = arith.constant 0 : i32
    %c0_i32_0 = arith.constant 0 : i32
    %c0_i32_1 = arith.constant 0 : i32
    return %arg0, %c0_i32, %c0_i32_0 : i32, i32, i32
  }
  func.func @transform_1(%arg0: i32) -> (i32, i32) {
    %c0_i32 = arith.constant 0 : i32
    %c0_i32_0 = arith.constant 0 : i32
    return %arg0, %c0_i32 : i32, i32
  }
}

</mosaic_0001>

<bundles_post_ra>
// kernel: tpu_custom_call.1
= control target key start
LH: loop header
LB: loop body
LE: loop exit
PB: predicated region body
PF: predicated region fallthrough
CT: control target
= control target key end

     0   :  { %vm15_vm0 = vcmask 15360   ;;  %vm19_vm1 = vcmask 11264   ;;  %v259_v9 = vmov 20.0   ;;  %s343_s0 = inlined_call_operand.vmem [shape: f32[2,20,2], index: 0, kind: input, shape index: {}]   ;;  %s344_s1 = inlined_call_operand.hbm [shape: f32[2,20], index: 1, kind: output, shape index: {}]  }
   0x1   :  { %v12_v0 = vld [vmem:[%s343_s0 + $0x18] sm:$0xff]  ;;  %v13_v1 = vld [vmem:[%s343_s0 + $0x20] sm:$0xff]  ;;  %v14_v2 = vld [vmem:[%s343_s0 + $0x28] sm:$0xf]  ;;  %221 = vrcp.f32 %v259_v9 }
   0x2   :  { %v28_v3 = vsel %vm15_vm0, %v12_v0, 0.0  ;;  %v29_v4 = vsel %vm15_vm0, %v13_v1, 0.0  ;;  %v31_v5 = vsel %vm19_vm1, %v14_v2, 0.0  ;;  %v9_v6 = vld [vmem:[%s343_s0] sm:$0xff]  ;;  %v10_v7 = vld [vmem:[%s343_s0 + $0x8] sm:$0xff] }
   0x3   :  { %v30_v8 = vadd.f32 %v29_v4, %v28_v3  ;;  %v11_v10 = vld [vmem:[%s343_s0 + $0x10] sm:$0xf]  ;;  %v16_v11 = vsel %vm15_vm0, %v9_v6, 0.0  ;;  %v17_v12 = vsel %vm15_vm0, %v10_v7, 0.0 }
   0x4   :  { %6 = vsyncpa [#allocation3], 0  ;;  %v18_v13 = vadd.f32 %v17_v12, %v16_v11  ;;  %v20_v14 = vsel %vm19_vm1, %v11_v10, 0.0  ;;  %s261_s0 = smov [#allocation2]   ;;  %s209_s21 = sshll.u32 %s344_s1, 4  ;;  %s210_s21 = int_to_ptr.hbm [resolvable:$true] %s209_s21 }
   0x5   :  { %v32_v15 = vadd.f32 %v31_v5, %v30_v8  ;;  %s207_s18 = sshll.u32 %s261_s0, 4  ;;  %s208_s18 = int_to_ptr.vmem [resolvable:$true] %s207_s18 }
   0x6   :  { %v21_v16 = vadd.f32 %v20_v14, %v18_v13 }
   0x7   :  { %v33_v17 = vrot.slane %v32_v15, 4  ;;  %v222_v19 = vpop.eup %221 }
   0x8   :  { %v22_v18 = vrot.slane %v21_v16, 4  ;;  %v40_v21 = vmul.f32 20.0, %v222_v19  ;;  %vm44_vm2 = vweird.f32 %v222_v19 }
   0x9   :  { %v34_v20 = vadd.f32 %v33_v17, %v32_v15 }
   0xa   :  { %v23_v22 = vadd.f32 %v22_v18, %v21_v16  ;;  %v41_v24 = vsub.f32 1.0, %v40_v21 }
   0xb   :  { %v35_v23 = vrot.slane %v34_v20, 2 }
   0xc   :  { %v24_v25 = vrot.slane %v23_v22, 2  ;;  %v42_v27 = vmul.f32 %v222_v19, %v41_v24 }
   0xd   :  { %v36_v26 = vadd.f32 %v35_v23, %v34_v20 }
   0xe   :  { %v25_v28 = vadd.f32 %v24_v25, %v23_v22  ;;  %v43_v30 = vadd.f32 %v222_v19, %v42_v27 }
   0xf   :  { %v37_v29 = vrot.slane %v36_v26, 1 }
  0x10   :  { %v26_v31 = vrot.slane %v25_v28, 1  ;;  %v45_v33 = vsel %vm44_vm2, %v222_v19, %v43_v30  ;;  %vm197_vm2 = vcmask 1041409  }
  0x11   :  { %v38_v32 = vadd.f32 %v37_v29, %v36_v26 }
  0x12   :  { %v27_v34 = vadd.f32 %v26_v31, %v25_v28 }
  0x13   :  { %v47_v35 = vmul.f32 %v45_v33, %v38_v32 }
  0x14   :  { %v46_v36 = vmul.f32 %v45_v33, %v27_v34 }
  0x15   :  { %v296_v37 = vsub.f32 %v12_v0, %v47_v35  ;;  %v298_v38 = vsub.f32 %v13_v1, %v47_v35  ;;  %v300_v39 = vsub.f32 %v14_v2, %v47_v35 }
  0x16   :  { %v302_v40 = vsub.f32 %v9_v6, %v46_v36  ;;  %v304_v41 = vsub.f32 %v10_v7, %v46_v36  ;;  %v306_v42 = vsub.f32 %v11_v10, %v46_v36 }
  0x17   :  { %v57_v43 = vmul.f32 %v296_v37, %v296_v37  ;;  %v58_v44 = vmul.f32 %v298_v38, %v298_v38  ;;  %v59_v45 = vmul.f32 %v300_v39, %v300_v39 }
  0x18   :  { %v54_v46 = vmul.f32 %v302_v40, %v302_v40  ;;  %v55_v47 = vmul.f32 %v304_v41, %v304_v41  ;;  %v56_v48 = vmul.f32 %v306_v42, %v306_v42 }
  0x19   :  { %v71_v49 = vsel %vm15_vm0, %v57_v43, 0.0  ;;  %v72_v50 = vsel %vm15_vm0, %v58_v44, 0.0  ;;  %v74_v51 = vsel %vm19_vm1, %v59_v45, 0.0 }
  0x1a   :  { %v73_v52 = vadd.f32 %v72_v50, %v71_v49  ;;  %v60_v53 = vsel %vm15_vm0, %v54_v46, 0.0  ;;  %v61_v54 = vsel %vm15_vm0, %v55_v47, 0.0  ;;  %v63_v55 = vsel %vm19_vm1, %v56_v48, 0.0 }
  0x1b   :  { %v62_v56 = vadd.f32 %v61_v54, %v60_v53 }
  0x1c   :  { %v75_v57 = vadd.f32 %v74_v51, %v73_v52 }
  0x1d   :  { %v64_v58 = vadd.f32 %v63_v55, %v62_v56 }
  0x1e   :  { %v76_v59 = vrot.slane %v75_v57, 4 }
  0x1f   :  { %v65_v60 = vrot.slane %v64_v58, 4 }
  0x20   :  { %v77_v61 = vadd.f32 %v76_v59, %v75_v57 }
  0x21   :  { %v66_v62 = vadd.f32 %v65_v60, %v64_v58 }
  0x22   :  { %v78_v63 = vrot.slane %v77_v61, 2 }
  0x23   :  { %v67_v0 = vrot.slane %v66_v62, 2 }
  0x24   :  { %v79_v1 = vadd.f32 %v78_v63, %v77_v61 }
  0x25   :  { %v68_v2 = vadd.f32 %v67_v0, %v66_v62 }
  0x26   :  { %v80_v3 = vrot.slane %v79_v1, 1 }
  0x27   :  { %v69_v4 = vrot.slane %v68_v2, 1 }
  0x28   :  { %v81_v5 = vadd.f32 %v80_v3, %v79_v1 }
  0x29   :  { %v70_v6 = vadd.f32 %v69_v4, %v68_v2 }
  0x2a   :  { %v83_v7 = vmul.f32 %v81_v5, %v45_v33 }
  0x2b   :  { %v82_v8 = vmul.f32 %v70_v6, %v45_v33 }
  0x2c   :  { %v85_v9 = vadd.f32 1e-05, %v83_v7 }
  0x2d   :  { %v84_v10 = vadd.f32 1e-05, %v82_v8 }
  0x2e   :  { %223 = vrsqrt.f32 %v85_v9  ;;  %vm105_vm3 = vcmp.eq.f32.partialorder %v85_v9, inf  ;;  %v108_v22 = vand.u32 2147483648, %v85_v9  ;;  %vm107_vm4 = vcmp.eq.f32.partialorder %v85_v9, 0.0 }
  0x2f   :  { %225 = vrsqrt.f32 %v84_v10  ;;  %vm93_vm5 = vcmp.eq.f32.partialorder %v84_v10, inf  ;;  %v96_v26 = vand.u32 2147483648, %v84_v10  ;;  %vm95_vm6 = vcmp.eq.f32.partialorder %v84_v10, 0.0 }
  0x34   :  { %v224_v11 = vpop.eup %223 }
  0x35   :  { %v226_v12 = vpop.eup %225  ;;  %v99_v13 = vmul.f32 %v224_v11, %v85_v9 }
  0x36   :  { %v87_v14 = vmul.f32 %v226_v12, %v84_v10 }
  0x37   :  { %v100_v15 = vmul.f32 %v224_v11, %v99_v13 }
  0x38   :  { %v88_v16 = vmul.f32 %v226_v12, %v87_v14 }
  0x39   :  { %v101_v17 = vmul.f32 0.5, %v100_v15 }
  0x3a   :  { %v89_v18 = vmul.f32 0.5, %v88_v16 }
  0x3b   :  { %v102_v19 = vsub.f32 1.5, %v101_v17 }
  0x3c   :  { %v90_v20 = vsub.f32 1.5, %v89_v18 }
  0x3d   :  { %v103_v21 = vmul.f32 %v224_v11, %v102_v19 }
  0x3e   :  { %v91_v23 = vmul.f32 %v226_v12, %v90_v20 }
  0x3f   :  { %v104_v24 = vmul.f32 %v103_v21, %v85_v9 }
  0x40   :  { %v92_v25 = vmul.f32 %v91_v23, %v84_v10 }
  0x41   :  { %v106_v27 = vsel %vm105_vm3, %v85_v9, %v104_v24  ;;  %vm200_vm3 = vcmask 156672  }
  0x42   :  { %v109_v28 = vsel %vm107_vm4, %v108_v22, %v106_v27  ;;  %v94_v29 = vsel %vm93_vm5, %v84_v10, %v92_v25 }
  0x43   :  { %227 = vrcp.f32 %v109_v28  ;;  %v97_v30 = vsel %vm95_vm6, %v96_v26, %v94_v29  ;;  %vm132_vm7 = vweird.f32 %v109_v28  ;;  %v138_v34 = vand.u32 2147483648, %v109_v28 }
  0x44   :  { %229 = vrcp.f32 %v97_v30  ;;  %v136_v36 = vand.u32 2147483647, %v109_v28  ;;  %vm115_vm9 = vweird.f32 %v97_v30  ;;  %v121_v44 = vand.u32 2147483648, %v97_v30 }
  0x45   :  { %v119_v47 = vand.u32 2147483647, %v97_v30  ;;  %v139_v48 = vor.u32 1.1754944e-38, %v138_v34 }
  0x46   :  { %vm137_vm12 = vcmp.eq.f32.partialorder %v136_v36, 8.507059e+37  ;;  %v122_v51 = vor.u32 1.1754944e-38, %v121_v44 }
  0x47   :  { %vm120_vm14 = vcmp.eq.f32.partialorder %v119_v47, 8.507059e+37 }
  0x49   :  { %v228_v31 = vpop.eup %227 }
  0x4a   :  { %v128_v32 = vmul.f32 %v228_v31, %v109_v28  ;;  %v230_v33 = vpop.eup %229  ;;  %vm133_vm8 = vweird.f32 %v228_v31 }
  0x4b   :  { %v111_v43 = vmul.f32 %v230_v33, %v97_v30  ;;  %vm116_vm10 = vweird.f32 %v230_v33  ;;  %vm134_vm11 = vmor %vm132_vm7, %vm133_vm8 }
  0x4c   :  { %v129_v35 = vsub.f32 1.0, %v128_v32  ;;  %vm117_vm13 = vmor %vm115_vm9, %vm116_vm10 }
  0x4d   :  { %v112_v46 = vsub.f32 1.0, %v111_v43 }
  0x4e   :  { %v130_v45 = vmul.f32 %v228_v31, %v129_v35 }
  0x4f   :  { %v113_v50 = vmul.f32 %v230_v33, %v112_v46 }
  0x50   :  { %v131_v49 = vadd.f32 %v228_v31, %v130_v45 }
  0x51   :  { %v114_v53 = vadd.f32 %v230_v33, %v113_v50 }
  0x52   :  { %v135_v52 = vsel %vm134_vm11, %v228_v31, %v131_v49 }
  0x53   :  { %v140_v54 = vsel %vm137_vm12, %v139_v48, %v135_v52  ;;  %v118_v56 = vsel %vm117_vm13, %v230_v33, %v114_v53 }
  0x54   :  { %v141_v55 = vmul.f32 %v140_v54, %v296_v37  ;;  %v123_v57 = vsel %vm120_vm14, %v122_v51, %v118_v56  ;;  %v142_v63 = vmul.f32 %v140_v54, %v298_v38  ;;  %v143_v37 = vmul.f32 %v140_v54, %v300_v39 }
  0x55   :  { %v124_v59 = vmul.f32 %v123_v57, %v302_v40  ;;  %v126_v60 = vmul.f32 %v123_v57, %v306_v42  ;;  %v125_v0 = vmul.f32 %v123_v57, %v304_v41  ;;  %v260_v42 = vmov 2.0  }
  0x56   :  { %v153_v58 = vsel %vm15_vm0, %v141_v55, 0.0  ;;  %v156_v1 = vsel %vm15_vm0, %v142_v63, 0.0  ;;  %v159_v40 = vsel %vm19_vm1, %v143_v37, 0.0  ;;  %231 = vrcp.f32 %v260_v42 }
  0x57   :  { %154 = vadd.xlane.f32.xlu1 %v153_v58  ;;  %v144_v61 = vsel %vm15_vm0, %v124_v59, 0.0  ;;  %v150_v62 = vsel %vm19_vm1, %v126_v60, 0.0  ;;  %v147_v2 = vsel %vm15_vm0, %v125_v0, 0.0  ;;  %v181_v41 = vlaneseq }
  0x58   :  { %145 = vadd.xlane.f32.xlu0 %v144_v61  ;;  %151 = vadd.xlane.f32.xlu2 %v150_v62  ;;  %vm186_vm0 = vcmask 130112   ;;  %vm190_vm1 = vcmask 195712  }
  0x59   :  { %v182_v10 = vand.u32 127, %v181_v41 }
  0x5b   :  { %v184_v12 = vadd.s32 4294967288, %v182_v10  ;;  %v188_v16 = vadd.s32 4294967280, %v182_v10 }
  0x5c   :  { %v232_v3 = vpop.eup %231 }
  0x5d   :  { %v163_v4 = vmul.f32 2.0, %v232_v3  ;;  %vm167_vm15 = vweird.f32 %v232_v3 }
  0x5f   :  { %157 = vadd.xlane.f32.xlu1 %v156_v1  ;;  %v164_v38 = vsub.f32 1.0, %v163_v4 }
  0x60   :  { %148 = vadd.xlane.f32.xlu0 %v147_v2  ;;  %160 = vadd.xlane.f32.xlu2 %v159_v40 }
  0x61   :  { %v165_v5 = vmul.f32 %v232_v3, %v164_v38 }
  0x63   :  { %v166_v6 = vadd.f32 %v232_v3, %v165_v5 }
  0x65   :  { %v168_v9 = vsel %vm167_vm15, %v232_v3, %v166_v6 }
  0xca   :  { %v155_v7 = vpop.xlane.xlu1 %154 }
  0xcb   :  { %v146_v39 = vpop.xlane.xlu0 %145  ;;  %v152_v8 = vpop.xlane.xlu2 %151  ;;  %v172_v11 = vmul.f32 %v168_v9, %v155_v7 }
  0xcc   :  { %v169_v14 = vmul.f32 %v168_v9, %v146_v39  ;;  %v171_v17 = vmul.f32 %v168_v9, %v152_v8 }
  0xcd   :  { %v192_v20 = vperm.slane %v172_v11, %v182_v10 }
  0xce   :  { %v183_v24 = vperm.slane %v169_v14, %v182_v10  ;;  %v189_v28 = vperm.slane %v171_v17, %v188_v16 }
  0xd2   :  { %v158_v13 = vpop.xlane.xlu1 %157 }
  0xd3   :  { %v173_v15 = vmul.f32 %v168_v9, %v158_v13  ;;  %v149_v18 = vpop.xlane.xlu0 %148  ;;  %v161_v19 = vpop.xlane.xlu2 %160 }
  0xd4   :  { %v170_v22 = vmul.f32 %v168_v9, %v149_v18  ;;  %v174_v23 = vmul.f32 %v168_v9, %v161_v19 }
  0xd5   :  { %v193_v21 = vperm.slane %v173_v15, %v184_v12 }
  0xd6   :  { %v185_v26 = vperm.slane %v170_v22, %v184_v12  ;;  %v195_v27 = vperm.slane %v174_v23, %v188_v16 }
  0xd7   :  { %v194_v25 = vsel %vm186_vm0, %v193_v21, %v192_v20 }
  0xd8   :  { %v187_v29 = vsel %vm186_vm0, %v185_v26, %v183_v24  ;;  %v196_v30 = vsel %vm190_vm1, %v195_v27, %v194_v25 }
  0xd9   :  { %v191_v31 = vsel %vm190_vm1, %v189_v28, %v187_v29 }
  0xda   :  { %v198_v32 = vsel %vm197_vm2, %v196_v30, %v191_v31 }
  0xdb   :  { %201 = vst.msk [vmem:[#allocation2] sm:$0x3] %vm200_vm3, %v198_v32 }
  0xdc   :  { %212 = dma.vmem_to_hbm [thread:$0]  %s208_s18, 32, %s210_s21, [#allocation3]  }
  0xdd   :  { %257 = dma.done.wait [#allocation3], 32  }
  0xde   :  { %258 = vsyncadd [#allocation3], 4294967264 }
  0xdf   :  { %217 = vsyncpa [#allocation3], 1 }

</bundles_post_ra>
